<compile_context>
chip_gen: v7x
topology: tpu7x:2x2x1
jax: 0.10.0
libtpu: 0.0.40
codegen_flags: <defaults>
</compile_context>

<pallas_src>
import functools

import jax
import jax.numpy as jnp
import numpy as np
from jax import lax
from jax.experimental import pallas as pl
from jax.experimental.pallas import tpu as pltpu


def mamba_kernel(
    x_ref,      # (M, Din)   M = batch_block * seq_len, rows time-major in block
    wx_ref,     # (Din, H)   in_proj weight, "x" half
    bx_ref,     # (1, H)
    wg_ref,     # (Din, H)   in_proj weight, "gate" half
    bg_ref,     # (1, H)
    cw_ref,     # (K, H)     depthwise conv taps (tap k, channel c)
    cb_ref,     # (1, H)
    wssm_ref,   # (H, S)
    bssm_ref,   # (1, S)
    at_ref,     # (S, S)     A^T  (h @ A^T == einsum('ij,bj->bi', A, h))
    bp_ref,     # (1, S)     B
    cp_ref,     # (1, S)     C
    wout_ref,   # (H, Din)
    bout_ref,   # (1, Din)
    o_ref,      # (M, Din)
    xpad_ref,   # VMEM scratch ((K-1)*Bb + M, H): zero-padded conv input
    uh_ref,     # VMEM scratch (M, S): holds u = B*x_ssm, overwritten with h_t
    *,
    seq_len: int,
    batch_block: int,
    mxu_dtype=jnp.float32,
):
    f32 = jnp.float32
    M = x_ref.shape[0]
    L = seq_len
    Bb = batch_block                      # multiple of 8 (enforced by wrapper)
    K, H = cw_ref.shape
    S = at_ref.shape[0]

    def mm(a, w_ref, b_ref):
        # Matmul over all M rows at once; operands optionally bf16, f32 accum.
        return (
            jnp.dot(a.astype(mxu_dtype), w_ref[...].astype(mxu_dtype),
                    preferred_element_type=f32)
            + b_ref[...].astype(f32)
        )

    xb = x_ref[...].astype(f32)                       # (M, Din)

    # ---- in_proj (both halves), batched over all B*L rows ------------------
    xc = mm(xb, wx_ref, bx_ref)                       # (M, H)
    gate = mm(xb, wg_ref, bg_ref)                     # (M, H)

    # ---- causal depthwise conv via one zero-padded VMEM scratch ------------
    # Time-major rows: a lag of d timesteps == a row shift of d*Bb.  The scratch
    # prepends (K-1)*Bb zero rows, so every tap is a static, sublane-aligned
    # shifted read -- no concatenates, no extra (M,H) copies.
    P = (K - 1) * Bb
    if P > 0:
        xpad_ref[0:P, :] = jnp.zeros((P, H), f32)
    xpad_ref[P:P + M, :] = xc
    cwv = cw_ref[...].astype(f32)                     # (K, H)
    conv = jnp.zeros((M, H), f32) + cb_ref[...].astype(f32)
    for k in range(K):                                # K tiny & static
        conv = conv + xpad_ref[k * Bb:k * Bb + M, :] * cwv[k:k + 1, :]
    x_act = conv * jax.nn.sigmoid(conv)               # SiLU, (M, H)

    # ---- ssm_proj, batched over all rows ------------------------------------
    x_ssm = mm(x_act, wssm_ref, bssm_ref)             # (M, S)

    # ---- sequential SSM recurrence (fori_loop, scratch-resident h trail) ----
    at = at_ref[...].astype(f32)                      # (S, S)
    uh_ref[...] = x_ssm * bp_ref[...].astype(f32)     # u = B * x_ssm, all rows

    unroll = max(u for u in (8, 4, 2, 1) if L % u == 0)

    def step(t, h):
        i = pl.multiple_of(t * Bb, Bb)                # Bb is a multiple of 8
        u_t = uh_ref[pl.ds(i, Bb), :]                 # (Bb, S)
        h = jnp.dot(h, at, preferred_element_type=f32) + u_t
        uh_ref[pl.ds(i, Bb), :] = h                   # overwrite u_t with h_t
        return h

    _ = lax.fori_loop(0, L, step, jnp.zeros((Bb, S), f32), unroll=unroll)

    # One batched C.h reduction instead of L per-step scalar reduces/stores.
    scal = jnp.sum(uh_ref[...] * cp_ref[...].astype(f32),
                   axis=-1, keepdims=True)            # (M, 1)

    # ---- gating + out_proj, single dense output store -----------------------
    gate_act = gate * jax.nn.sigmoid(gate)
    y = (scal * x_act) * gate_act                     # (M, H)
    o_ref[...] = mm(y, wout_ref, bout_ref)            # (M, Din)


def mamba_block(x, params, *, batch_block=None, mxu_dtype=jnp.float32):
    B, L, Din = x.shape
    H = params["wx"].shape[1]
    S = params["a"].shape[0]
    K = params["cw"].shape[0]

    # --- Bb: multiple of 8 (f32 sublane), >= 8; >= 2 grid steps when possible.
    if batch_block is None:
        if B >= 16:
            batch_block = max(8, ((B // 2) // 8) * 8)   # ~half batch, 8-aligned
        else:
            batch_block = 8
    batch_block = max(8, ((batch_block + 7) // 8) * 8)

    n_blocks = (B + batch_block - 1) // batch_block
    Bp = n_blocks * batch_block
    if Bp != B:
        x = jnp.concatenate(
            [x, jnp.zeros((Bp - B, L, Din), x.dtype)], axis=0)

    # Rows grouped by batch-block, time-major within the block:
    # row index inside a block = t * batch_block + b (pure layout plumbing).
    x_p = jnp.transpose(
        x.reshape(n_blocks, batch_block, L, Din), (0, 2, 1, 3)
    ).reshape(n_blocks * L * batch_block, Din)

    M_blk = batch_block * L

    # Kernel consumes A^T so the recurrence is a plain h @ A^T matmul.
    kparams = {
        "wx": params["wx"], "bx": params["bx"],
        "wg": params["wg"], "bg": params["bg"],
        "cw": params["cw"], "cb": params["cb"],
        "wssm": params["wssm"], "bssm": params["bssm"],
        "at": jnp.transpose(params["a"]),
        "bp": params["b"], "cp": params["c"],
        "wout": params["wout"], "bout": params["bout"],
    }
    if mxu_dtype == jnp.bfloat16:
        # bf16 weights in HBM halve DMA bytes / resident VMEM; f32 accumulate.
        for k in ("wx", "wg", "wssm", "wout"):
            kparams[k] = kparams[k].astype(jnp.bfloat16)

    param_order = ["wx", "bx", "wg", "bg", "cw", "cb", "wssm", "bssm",
                   "at", "bp", "cp", "wout", "bout"]
    param_vals = [kparams[k] for k in param_order]

    def invariant_spec(shape):
        # Grid-invariant parameter: single-buffered (no 2x VMEM for constants).
        nd = len(shape)
        return pl.BlockSpec(shape, lambda b: (0,) * nd,
                            pipeline_mode=pl.Buffered(1))

    in_specs = [pl.BlockSpec((M_blk, Din), lambda b: (b, 0))]
    in_specs += [invariant_spec(p.shape) for p in param_vals]

    # Rough per-block working-set -> explicit VMEM limit (v7x has 64 MiB).
    nbytes = lambda a: int(a.size) * a.dtype.itemsize
    param_bytes = sum(nbytes(p) for p in param_vals)
    io_bytes = 2 * 2 * M_blk * Din * 4                     # double-buffered in+out
    scratch_bytes = batch_block * (L + K - 1) * H * 4 + M_blk * S * 4
    live_bytes = 6 * M_blk * H * 4                         # xc/gate/conv/x_act/y/...
    est = 2 * param_bytes + io_bytes + scratch_bytes + live_bytes
    vmem_limit = int(min(max(2 * est, 16 << 20), 100 << 20))

    kernel = functools.partial(mamba_kernel, seq_len=L,
                               batch_block=batch_block, mxu_dtype=mxu_dtype)

    out_p = pl.pallas_call(
        kernel,
        out_shape=jax.ShapeDtypeStruct((n_blocks * M_blk, Din), jnp.float32),
        grid_spec=pltpu.PrefetchScalarGridSpec(
            num_scalar_prefetch=0,
            grid=(n_blocks,),
            in_specs=in_specs,
            out_specs=pl.BlockSpec((M_blk, Din), lambda b: (b, 0)),
            scratch_shapes=[
                pltpu.VMEM((batch_block * (L + K - 1), H), jnp.float32),
                pltpu.VMEM((M_blk, S), jnp.float32),
            ]),
        compiler_params=pltpu.CompilerParams(
            dimension_semantics=("parallel",),
            vmem_limit_bytes=vmem_limit),
    )(x_p, *param_vals)

    out = jnp.transpose(
        out_p.reshape(n_blocks, L, batch_block, Din), (0, 2, 1, 3)
    ).reshape(Bp, L, Din)
    return out[:B]


def mamba_ref(x, params):
    """Pure-JAX reference mirroring the PyTorch forward exactly (incl. einsums)."""
    B, L, Din = x.shape
    K = params["cw"].shape[0]
    S = params["a"].shape[0]

    xc = x @ params["wx"] + params["bx"][0]
    gate = x @ params["wg"] + params["bg"][0]

    pad = jnp.pad(xc, ((0, 0), (K - 1, 0), (0, 0)))
    conv = sum(pad[:, k:k + L, :] * params["cw"][k][None, None, :]
               for k in range(K)) + params["cb"][0]
    x_act = jax.nn.silu(conv)

    x_ssm = x_act @ params["wssm"] + params["bssm"][0]

    h = jnp.zeros((B, S), jnp.float32)
    outs = []
    for t in range(L):
        h = jnp.einsum('ij,bj->bi', params["a"], h) + x_ssm[:, t, :] * params["b"][0]
        scal = jnp.einsum('j,bj->b', params["c"][0], h)
        outs.append(scal[:, None] * x_act[:, t, :])
    ssm_out = jnp.stack(outs, axis=1)

    y = ssm_out * jax.nn.silu(gate)
    return y @ params["wout"] + params["bout"][0]


def make_params(key, input_size, hidden_size, d_state, d_conv):
    ks = jax.random.split(key, 13)
    s = 0.1
    f32 = jnp.float32
    return {
        "wx":   jax.random.normal(ks[0], (input_size, hidden_size), f32) * s,
        "bx":   jax.random.normal(ks[1], (1, hidden_size), f32) * s,
        "wg":   jax.random.normal(ks[2], (input_size, hidden_size), f32) * s,
        "bg":   jax.random.normal(ks[3], (1, hidden_size), f32) * s,
        "cw":   jax.random.normal(ks[4], (d_conv, hidden_size), f32) * s,
        "cb":   jax.random.normal(ks[5], (1, hidden_size), f32) * s,
        "wssm": jax.random.normal(ks[6], (hidden_size, d_state), f32) * s,
        "bssm": jax.random.normal(ks[7], (1, d_state), f32) * s,
        # NON-symmetric A so the test checks the einsum('ij,bj->bi') transpose
        # convention (the module's init A = -ones is symmetric and would hide it).
        "a":    jax.random.normal(ks[8], (d_state, d_state), f32) * s,
        "b":    jax.random.normal(ks[9], (1, d_state), f32) * s + 1.0,
        "c":    jax.random.normal(ks[10], (1, d_state), f32) * s + 1.0,
        "wout": jax.random.normal(ks[11], (hidden_size, input_size), f32) * s,
        "bout": jax.random.normal(ks[12], (1, input_size), f32) * s,
        # NOTE: the module's D parameter is defined but never used in forward(); omitted.
    }


if __name__ == "__main__":
    input_size, hidden_size, d_state, d_conv = 16, 32, 16, 4
    seq_len = 8

    key = jax.random.PRNGKey(0)
    kx, kp, kx2 = jax.random.split(key, 3)
    params = make_params(kp, input_size, hidden_size, d_state, d_conv)

    # --- primary toy case (batch=2): single grid step, batch padded to Bb=8 ---
    x = jax.random.normal(kx, (2, seq_len, input_size), jnp.float32)
    out = jax.block_until_ready(mamba_block(x, params))
    ref = jax.block_until_ready(mamba_ref(x, params))
    assert out.shape == (2, seq_len, input_size)
    atol = 1e-3 * float(jnp.max(jnp.abs(ref))) + 1e-5
    np.testing.assert_allclose(np.asarray(out), np.asarray(ref), rtol=1e-2, atol=atol)

    # --- multi-block case (batch=18 -> 3 grid steps of Bb=8, with padding) ----
    # Exercises the "parallel" grid axis (megacore on v7x) and the batch-pad path.
    x2 = jax.random.normal(kx2, (18, seq_len, input_size), jnp.float32)
    out2 = jax.block_until_ready(mamba_block(x2, params))
    ref2 = jax.block_until_ready(mamba_ref(x2, params))
    atol2 = 1e-3 * float(jnp.max(jnp.abs(ref2))) + 1e-5
    np.testing.assert_allclose(np.asarray(out2), np.asarray(ref2), rtol=1e-2, atol=atol2)

    print("KERNEL_OK")
</pallas_src>

<mosaic_0001>
module attributes {stable_mosaic.version = 11 : i64} {
  func.func @mamba_kernel(%arg0: i32, %arg1: memref<64x16xf32, #tpu.memory_space<vmem>>, %arg2: memref<16x32xf32, #tpu.memory_space<vmem>>, %arg3: memref<1x32xf32, #tpu.memory_space<vmem>>, %arg4: memref<16x32xf32, #tpu.memory_space<vmem>>, %arg5: memref<1x32xf32, #tpu.memory_space<vmem>>, %arg6: memref<4x32xf32, #tpu.memory_space<vmem>>, %arg7: memref<1x32xf32, #tpu.memory_space<vmem>>, %arg8: memref<32x16xf32, #tpu.memory_space<vmem>>, %arg9: memref<1x16xf32, #tpu.memory_space<vmem>>, %arg10: memref<16x16xf32, #tpu.memory_space<vmem>>, %arg11: memref<1x16xf32, #tpu.memory_space<vmem>>, %arg12: memref<1x16xf32, #tpu.memory_space<vmem>>, %arg13: memref<32x16xf32, #tpu.memory_space<vmem>>, %arg14: memref<1x16xf32, #tpu.memory_space<vmem>>, %arg15: memref<64x16xf32, #tpu.memory_space<vmem>>, %arg16: memref<88x32xf32, #tpu.memory_space<vmem>>, %arg17: memref<64x16xf32, #tpu.memory_space<vmem>>) attributes {dimension_semantics = [#tpu.dimension_semantics<parallel>], iteration_bounds = array<i64: 1>, scalar_prefetch = 0 : i64, scratch_operands = 2 : i64, tpu.core_type = #tpu.core_type<tc>, window_params = [{transform_indices = @transform_0, window_bounds = array<i64: 64, 16>}, {pipeline_mode = #tpu.pipeline_mode<synchronous>, transform_indices = @transform_1, window_bounds = array<i64: 16, 32>}, {pipeline_mode = #tpu.pipeline_mode<synchronous>, transform_indices = @transform_2, window_bounds = array<i64: 1, 32>}, {pipeline_mode = #tpu.pipeline_mode<synchronous>, transform_indices = @transform_3, window_bounds = array<i64: 16, 32>}, {pipeline_mode = #tpu.pipeline_mode<synchronous>, transform_indices = @transform_4, window_bounds = array<i64: 1, 32>}, {pipeline_mode = #tpu.pipeline_mode<synchronous>, transform_indices = @transform_5, window_bounds = array<i64: 4, 32>}, {pipeline_mode = #tpu.pipeline_mode<synchronous>, transform_indices = @transform_6, window_bounds = array<i64: 1, 32>}, {pipeline_mode = #tpu.pipeline_mode<synchronous>, transform_indices = @transform_7, window_bounds = array<i64: 32, 16>}, {pipeline_mode = #tpu.pipeline_mode<synchronous>, transform_indices = @transform_8, window_bounds = array<i64: 1, 16>}, {pipeline_mode = #tpu.pipeline_mode<synchronous>, transform_indices = @transform_9, window_bounds = array<i64: 16, 16>}, {pipeline_mode = #tpu.pipeline_mode<synchronous>, transform_indices = @transform_10, window_bounds = array<i64: 1, 16>}, {pipeline_mode = #tpu.pipeline_mode<synchronous>, transform_indices = @transform_11, window_bounds = array<i64: 1, 16>}, {pipeline_mode = #tpu.pipeline_mode<synchronous>, transform_indices = @transform_12, window_bounds = array<i64: 32, 16>}, {pipeline_mode = #tpu.pipeline_mode<synchronous>, transform_indices = @transform_13, window_bounds = array<i64: 1, 16>}, {transform_indices = @transform_14, window_bounds = array<i64: 64, 16>}]} {
    %c0 = arith.constant 0 : index
    %c0_0 = arith.constant 0 : index
    %0 = vector.load %arg1[%c0, %c0_0] : memref<64x16xf32, #tpu.memory_space<vmem>>, vector<64x16xf32>
    %c0_1 = arith.constant 0 : index
    %c0_2 = arith.constant 0 : index
    %1 = vector.load %arg2[%c0_1, %c0_2] : memref<16x32xf32, #tpu.memory_space<vmem>>, vector<16x32xf32>
    %cst = arith.constant dense<0.000000e+00> : vector<64x32xf32>
    %2 = tpu.matmul %0, %1, %cst {dimension_numbers = #tpu.dot_dimension_numbers<[1], [0], [0], [1], [0, 0, 1, 1], [], []>} : vector<64x16xf32>, vector<16x32xf32>, vector<64x32xf32> -> vector<64x32xf32>
    %c0_3 = arith.constant 0 : index
    %c0_4 = arith.constant 0 : index
    %3 = vector.load %arg3[%c0_3, %c0_4] : memref<1x32xf32, #tpu.memory_space<vmem>>, vector<1x32xf32>
    %4 = vector.broadcast %3 : vector<1x32xf32> to vector<64x32xf32>
    %5 = arith.addf %2, %4 : vector<64x32xf32>
    %c0_5 = arith.constant 0 : index
    %c0_6 = arith.constant 0 : index
    %6 = vector.load %arg4[%c0_5, %c0_6] : memref<16x32xf32, #tpu.memory_space<vmem>>, vector<16x32xf32>
    %cst_7 = arith.constant dense<0.000000e+00> : vector<64x32xf32>
    %7 = tpu.matmul %0, %6, %cst_7 {dimension_numbers = #tpu.dot_dimension_numbers<[1], [0], [0], [1], [0, 0, 1, 1], [], []>} : vector<64x16xf32>, vector<16x32xf32>, vector<64x32xf32> -> vector<64x32xf32>
    %c0_8 = arith.constant 0 : index
    %c0_9 = arith.constant 0 : index
    %8 = vector.load %arg5[%c0_8, %c0_9] : memref<1x32xf32, #tpu.memory_space<vmem>>, vector<1x32xf32>
    %9 = vector.broadcast %8 : vector<1x32xf32> to vector<64x32xf32>
    %10 = arith.addf %7, %9 : vector<64x32xf32>
    %cst_10 = arith.constant 0.000000e+00 : f32
    %11 = vector.broadcast %cst_10 : f32 to vector<24x32xf32>
    %c0_11 = arith.constant 0 : index
    %c0_12 = arith.constant 0 : index
    %12 = vector.load %arg16[%c0_11, %c0_12] : memref<88x32xf32, #tpu.memory_space<vmem>>, vector<24x32xf32>
    tpu.vector_store %arg16[%c0_11, %c0_12], %11 {strides = array<i32>} : memref<88x32xf32, #tpu.memory_space<vmem>>, vector<24x32xf32>,
    %c24 = arith.constant 24 : index
    %c0_13 = arith.constant 0 : index
    %13 = vector.load %arg16[%c24, %c0_13] : memref<88x32xf32, #tpu.memory_space<vmem>>, vector<64x32xf32>
    tpu.vector_store %arg16[%c24, %c0_13], %5 {strides = array<i32>} : memref<88x32xf32, #tpu.memory_space<vmem>>, vector<64x32xf32>,
    %c0_14 = arith.constant 0 : index
    %c0_15 = arith.constant 0 : index
    %14 = vector.load %arg6[%c0_14, %c0_15] : memref<4x32xf32, #tpu.memory_space<vmem>>, vector<4x32xf32>
    %cst_16 = arith.constant 0.000000e+00 : f32
    %15 = vector.broadcast %cst_16 : f32 to vector<64x32xf32>
    %c0_17 = arith.constant 0 : index
    %c0_18 = arith.constant 0 : index
    %16 = vector.load %arg7[%c0_17, %c0_18] : memref<1x32xf32, #tpu.memory_space<vmem>>, vector<1x32xf32>
    %17 = vector.broadcast %16 : vector<1x32xf32> to vector<64x32xf32>
    %18 = arith.addf %15, %17 : vector<64x32xf32>
    %c0_19 = arith.constant 0 : index
    %c0_20 = arith.constant 0 : index
    %19 = vector.load %arg16[%c0_19, %c0_20] : memref<88x32xf32, #tpu.memory_space<vmem>>, vector<64x32xf32>
    %20 = vector.extract_strided_slice %14 {offsets = [0, 0], sizes = [1, 32], strides = [1, 1]} : vector<4x32xf32> to vector<1x32xf32>
    %21 = vector.broadcast %20 : vector<1x32xf32> to vector<64x32xf32>
    %22 = arith.mulf %19, %21 : vector<64x32xf32>
    %23 = arith.addf %18, %22 : vector<64x32xf32>
    %c8 = arith.constant 8 : index
    %c0_21 = arith.constant 0 : index
    %24 = vector.load %arg16[%c8, %c0_21] : memref<88x32xf32, #tpu.memory_space<vmem>>, vector<64x32xf32>
    %25 = vector.extract_strided_slice %14 {offsets = [1, 0], sizes = [1, 32], strides = [1, 1]} : vector<4x32xf32> to vector<1x32xf32>
    %26 = vector.broadcast %25 : vector<1x32xf32> to vector<64x32xf32>
    %27 = arith.mulf %24, %26 : vector<64x32xf32>
    %28 = arith.addf %23, %27 : vector<64x32xf32>
    %c16 = arith.constant 16 : index
    %c0_22 = arith.constant 0 : index
    %29 = vector.load %arg16[%c16, %c0_22] : memref<88x32xf32, #tpu.memory_space<vmem>>, vector<64x32xf32>
    %30 = vector.extract_strided_slice %14 {offsets = [2, 0], sizes = [1, 32], strides = [1, 1]} : vector<4x32xf32> to vector<1x32xf32>
    %31 = vector.broadcast %30 : vector<1x32xf32> to vector<64x32xf32>
    %32 = arith.mulf %29, %31 : vector<64x32xf32>
    %33 = arith.addf %28, %32 : vector<64x32xf32>
    %c24_23 = arith.constant 24 : index
    %c0_24 = arith.constant 0 : index
    %34 = vector.load %arg16[%c24_23, %c0_24] : memref<88x32xf32, #tpu.memory_space<vmem>>, vector<64x32xf32>
    %35 = vector.extract_strided_slice %14 {offsets = [3, 0], sizes = [1, 32], strides = [1, 1]} : vector<4x32xf32> to vector<1x32xf32>
    %36 = vector.broadcast %35 : vector<1x32xf32> to vector<64x32xf32>
    %37 = arith.mulf %34, %36 : vector<64x32xf32>
    %38 = arith.addf %33, %37 : vector<64x32xf32>
    %39 = arith.negf %38 : vector<64x32xf32>
    %40 = math.exp %39 : vector<64x32xf32>
    %cst_25 = arith.constant 1.000000e+00 : f32
    %41 = vector.broadcast %cst_25 : f32 to vector<64x32xf32>
    %42 = arith.addf %41, %40 : vector<64x32xf32>
    %43 = arith.divf %41, %42 : vector<64x32xf32>
    %44 = arith.mulf %38, %43 : vector<64x32xf32>
    %c0_26 = arith.constant 0 : index
    %c0_27 = arith.constant 0 : index
    %45 = vector.load %arg8[%c0_26, %c0_27] : memref<32x16xf32, #tpu.memory_space<vmem>>, vector<32x16xf32>
    %cst_28 = arith.constant dense<0.000000e+00> : vector<64x16xf32>
    %46 = tpu.matmul %44, %45, %cst_28 {dimension_numbers = #tpu.dot_dimension_numbers<[1], [0], [0], [1], [0, 0, 1, 1], [], []>} : vector<64x32xf32>, vector<32x16xf32>, vector<64x16xf32> -> vector<64x16xf32>
    %c0_29 = arith.constant 0 : index
    %c0_30 = arith.constant 0 : index
    %47 = vector.load %arg9[%c0_29, %c0_30] : memref<1x16xf32, #tpu.memory_space<vmem>>, vector<1x16xf32>
    %48 = vector.broadcast %47 : vector<1x16xf32> to vector<64x16xf32>
    %49 = arith.addf %46, %48 : vector<64x16xf32>
    %c0_31 = arith.constant 0 : index
    %c0_32 = arith.constant 0 : index
    %50 = vector.load %arg10[%c0_31, %c0_32] : memref<16x16xf32, #tpu.memory_space<vmem>>, vector<16x16xf32>
    %c0_33 = arith.constant 0 : index
    %c0_34 = arith.constant 0 : index
    %51 = vector.load %arg11[%c0_33, %c0_34] : memref<1x16xf32, #tpu.memory_space<vmem>>, vector<1x16xf32>
    %52 = vector.broadcast %51 : vector<1x16xf32> to vector<64x16xf32>
    %53 = arith.mulf %49, %52 : vector<64x16xf32>
    %c0_35 = arith.constant 0 : index
    %c0_36 = arith.constant 0 : index
    %54 = vector.load %arg17[%c0_35, %c0_36] : memref<64x16xf32, #tpu.memory_space<vmem>>, vector<64x16xf32>
    tpu.vector_store %arg17[%c0_35, %c0_36], %53 {strides = array<i32>} : memref<64x16xf32, #tpu.memory_space<vmem>>, vector<64x16xf32>,
    %cst_37 = arith.constant 0.000000e+00 : f32
    %55 = vector.broadcast %cst_37 : f32 to vector<8x16xf32>
    %c0_i32 = arith.constant 0 : i32
    %c8_i32 = arith.constant 8 : i32
    %56 = arith.muli %c0_i32, %c8_i32 : i32
    %57 = tpu.assume_multiple %56, 8 : i32
    %58 = arith.index_cast %57 : i32 to index
    %c0_38 = arith.constant 0 : index
    %59 = vector.load %arg17[%58, %c0_38] : memref<64x16xf32, #tpu.memory_space<vmem>>, vector<8x16xf32>
    %cst_39 = arith.constant dense<0.000000e+00> : vector<8x16xf32>
    %60 = tpu.matmul %55, %50, %cst_39 {dimension_numbers = #tpu.dot_dimension_numbers<[1], [0], [0], [1], [0, 0, 1, 1], [], []>} : vector<8x16xf32>, vector<16x16xf32>, vector<8x16xf32> -> vector<8x16xf32>
    %61 = arith.addf %60, %59 : vector<8x16xf32>
    %62 = arith.index_cast %57 : i32 to index
    %c0_40 = arith.constant 0 : index
    %63 = vector.load %arg17[%62, %c0_40] : memref<64x16xf32, #tpu.memory_space<vmem>>, vector<8x16xf32>
    tpu.vector_store %arg17[%62, %c0_40], %61 {strides = array<i32>} : memref<64x16xf32, #tpu.memory_space<vmem>>, vector<8x16xf32>,
    %c1_i32 = arith.constant 1 : i32
    %c8_i32_41 = arith.constant 8 : i32
    %64 = arith.muli %c1_i32, %c8_i32_41 : i32
    %65 = tpu.assume_multiple %64, 8 : i32
    %66 = arith.index_cast %65 : i32 to index
    %c0_42 = arith.constant 0 : index
    %67 = vector.load %arg17[%66, %c0_42] : memref<64x16xf32, #tpu.memory_space<vmem>>, vector<8x16xf32>
    %cst_43 = arith.constant dense<0.000000e+00> : vector<8x16xf32>
    %68 = tpu.matmul %61, %50, %cst_43 {dimension_numbers = #tpu.dot_dimension_numbers<[1], [0], [0], [1], [0, 0, 1, 1], [], []>} : vector<8x16xf32>, vector<16x16xf32>, vector<8x16xf32> -> vector<8x16xf32>
    %69 = arith.addf %68, %67 : vector<8x16xf32>
    %70 = arith.index_cast %65 : i32 to index
    %c0_44 = arith.constant 0 : index
    %71 = vector.load %arg17[%70, %c0_44] : memref<64x16xf32, #tpu.memory_space<vmem>>, vector<8x16xf32>
    tpu.vector_store %arg17[%70, %c0_44], %69 {strides = array<i32>} : memref<64x16xf32, #tpu.memory_space<vmem>>, vector<8x16xf32>,
    %c2_i32 = arith.constant 2 : i32
    %c8_i32_45 = arith.constant 8 : i32
    %72 = arith.muli %c2_i32, %c8_i32_45 : i32
    %73 = tpu.assume_multiple %72, 8 : i32
    %74 = arith.index_cast %73 : i32 to index
    %c0_46 = arith.constant 0 : index
    %75 = vector.load %arg17[%74, %c0_46] : memref<64x16xf32, #tpu.memory_space<vmem>>, vector<8x16xf32>
    %cst_47 = arith.constant dense<0.000000e+00> : vector<8x16xf32>
    %76 = tpu.matmul %69, %50, %cst_47 {dimension_numbers = #tpu.dot_dimension_numbers<[1], [0], [0], [1], [0, 0, 1, 1], [], []>} : vector<8x16xf32>, vector<16x16xf32>, vector<8x16xf32> -> vector<8x16xf32>
    %77 = arith.addf %76, %75 : vector<8x16xf32>
    %78 = arith.index_cast %73 : i32 to index
    %c0_48 = arith.constant 0 : index
    %79 = vector.load %arg17[%78, %c0_48] : memref<64x16xf32, #tpu.memory_space<vmem>>, vector<8x16xf32>
    tpu.vector_store %arg17[%78, %c0_48], %77 {strides = array<i32>} : memref<64x16xf32, #tpu.memory_space<vmem>>, vector<8x16xf32>,
    %c3_i32 = arith.constant 3 : i32
    %c8_i32_49 = arith.constant 8 : i32
    %80 = arith.muli %c3_i32, %c8_i32_49 : i32
    %81 = tpu.assume_multiple %80, 8 : i32
    %82 = arith.index_cast %81 : i32 to index
    %c0_50 = arith.constant 0 : index
    %83 = vector.load %arg17[%82, %c0_50] : memref<64x16xf32, #tpu.memory_space<vmem>>, vector<8x16xf32>
    %cst_51 = arith.constant dense<0.000000e+00> : vector<8x16xf32>
    %84 = tpu.matmul %77, %50, %cst_51 {dimension_numbers = #tpu.dot_dimension_numbers<[1], [0], [0], [1], [0, 0, 1, 1], [], []>} : vector<8x16xf32>, vector<16x16xf32>, vector<8x16xf32> -> vector<8x16xf32>
    %85 = arith.addf %84, %83 : vector<8x16xf32>
    %86 = arith.index_cast %81 : i32 to index
    %c0_52 = arith.constant 0 : index
    %87 = vector.load %arg17[%86, %c0_52] : memref<64x16xf32, #tpu.memory_space<vmem>>, vector<8x16xf32>
    tpu.vector_store %arg17[%86, %c0_52], %85 {strides = array<i32>} : memref<64x16xf32, #tpu.memory_space<vmem>>, vector<8x16xf32>,
    %c4_i32 = arith.constant 4 : i32
    %c8_i32_53 = arith.constant 8 : i32
    %88 = arith.muli %c4_i32, %c8_i32_53 : i32
    %89 = tpu.assume_multiple %88, 8 : i32
    %90 = arith.index_cast %89 : i32 to index
    %c0_54 = arith.constant 0 : index
    %91 = vector.load %arg17[%90, %c0_54] : memref<64x16xf32, #tpu.memory_space<vmem>>, vector<8x16xf32>
    %cst_55 = arith.constant dense<0.000000e+00> : vector<8x16xf32>
    %92 = tpu.matmul %85, %50, %cst_55 {dimension_numbers = #tpu.dot_dimension_numbers<[1], [0], [0], [1], [0, 0, 1, 1], [], []>} : vector<8x16xf32>, vector<16x16xf32>, vector<8x16xf32> -> vector<8x16xf32>
    %93 = arith.addf %92, %91 : vector<8x16xf32>
    %94 = arith.index_cast %89 : i32 to index
    %c0_56 = arith.constant 0 : index
    %95 = vector.load %arg17[%94, %c0_56] : memref<64x16xf32, #tpu.memory_space<vmem>>, vector<8x16xf32>
    tpu.vector_store %arg17[%94, %c0_56], %93 {strides = array<i32>} : memref<64x16xf32, #tpu.memory_space<vmem>>, vector<8x16xf32>,
    %c5_i32 = arith.constant 5 : i32
    %c8_i32_57 = arith.constant 8 : i32
    %96 = arith.muli %c5_i32, %c8_i32_57 : i32
    %97 = tpu.assume_multiple %96, 8 : i32
    %98 = arith.index_cast %97 : i32 to index
    %c0_58 = arith.constant 0 : index
    %99 = vector.load %arg17[%98, %c0_58] : memref<64x16xf32, #tpu.memory_space<vmem>>, vector<8x16xf32>
    %cst_59 = arith.constant dense<0.000000e+00> : vector<8x16xf32>
    %100 = tpu.matmul %93, %50, %cst_59 {dimension_numbers = #tpu.dot_dimension_numbers<[1], [0], [0], [1], [0, 0, 1, 1], [], []>} : vector<8x16xf32>, vector<16x16xf32>, vector<8x16xf32> -> vector<8x16xf32>
    %101 = arith.addf %100, %99 : vector<8x16xf32>
    %102 = arith.index_cast %97 : i32 to index
    %c0_60 = arith.constant 0 : index
    %103 = vector.load %arg17[%102, %c0_60] : memref<64x16xf32, #tpu.memory_space<vmem>>, vector<8x16xf32>
    tpu.vector_store %arg17[%102, %c0_60], %101 {strides = array<i32>} : memref<64x16xf32, #tpu.memory_space<vmem>>, vector<8x16xf32>,
    %c6_i32 = arith.constant 6 : i32
    %c8_i32_61 = arith.constant 8 : i32
    %104 = arith.muli %c6_i32, %c8_i32_61 : i32
    %105 = tpu.assume_multiple %104, 8 : i32
    %106 = arith.index_cast %105 : i32 to index
    %c0_62 = arith.constant 0 : index
    %107 = vector.load %arg17[%106, %c0_62] : memref<64x16xf32, #tpu.memory_space<vmem>>, vector<8x16xf32>
    %cst_63 = arith.constant dense<0.000000e+00> : vector<8x16xf32>
    %108 = tpu.matmul %101, %50, %cst_63 {dimension_numbers = #tpu.dot_dimension_numbers<[1], [0], [0], [1], [0, 0, 1, 1], [], []>} : vector<8x16xf32>, vector<16x16xf32>, vector<8x16xf32> -> vector<8x16xf32>
    %109 = arith.addf %108, %107 : vector<8x16xf32>
    %110 = arith.index_cast %105 : i32 to index
    %c0_64 = arith.constant 0 : index
    %111 = vector.load %arg17[%110, %c0_64] : memref<64x16xf32, #tpu.memory_space<vmem>>, vector<8x16xf32>
    tpu.vector_store %arg17[%110, %c0_64], %109 {strides = array<i32>} : memref<64x16xf32, #tpu.memory_space<vmem>>, vector<8x16xf32>,
    %c7_i32 = arith.constant 7 : i32
    %c8_i32_65 = arith.constant 8 : i32
    %112 = arith.muli %c7_i32, %c8_i32_65 : i32
    %113 = tpu.assume_multiple %112, 8 : i32
    %114 = arith.index_cast %113 : i32 to index
    %c0_66 = arith.constant 0 : index
    %115 = vector.load %arg17[%114, %c0_66] : memref<64x16xf32, #tpu.memory_space<vmem>>, vector<8x16xf32>
    %cst_67 = arith.constant dense<0.000000e+00> : vector<8x16xf32>
    %116 = tpu.matmul %109, %50, %cst_67 {dimension_numbers = #tpu.dot_dimension_numbers<[1], [0], [0], [1], [0, 0, 1, 1], [], []>} : vector<8x16xf32>, vector<16x16xf32>, vector<8x16xf32> -> vector<8x16xf32>
    %117 = arith.addf %116, %115 : vector<8x16xf32>
    %118 = arith.index_cast %113 : i32 to index
    %c0_68 = arith.constant 0 : index
    %119 = vector.load %arg17[%118, %c0_68] : memref<64x16xf32, #tpu.memory_space<vmem>>, vector<8x16xf32>
    tpu.vector_store %arg17[%118, %c0_68], %117 {strides = array<i32>} : memref<64x16xf32, #tpu.memory_space<vmem>>, vector<8x16xf32>,
    %c8_i32_69 = arith.constant 8 : i32
    %c0_70 = arith.constant 0 : index
    %c0_71 = arith.constant 0 : index
    %120 = vector.load %arg17[%c0_70, %c0_71] : memref<64x16xf32, #tpu.memory_space<vmem>>, vector<64x16xf32>
    %c0_72 = arith.constant 0 : index
    %c0_73 = arith.constant 0 : index
    %121 = vector.load %arg12[%c0_72, %c0_73] : memref<1x16xf32, #tpu.memory_space<vmem>>, vector<1x16xf32>
    %122 = vector.broadcast %121 : vector<1x16xf32> to vector<64x16xf32>
    %123 = arith.mulf %120, %122 : vector<64x16xf32>
    %cst_74 = arith.constant dense<0.000000e+00> : vector<64xf32>
    %124 = vector.multi_reduction <add>, %123, %cst_74 [1] : vector<64x16xf32> to vector<64xf32>
    %125 = vector.shape_cast %124 : vector<64xf32> to vector<64x1xf32>
    %126 = arith.negf %10 : vector<64x32xf32>
    %127 = math.exp %126 : vector<64x32xf32>
    %cst_75 = arith.constant 1.000000e+00 : f32
    %128 = vector.broadcast %cst_75 : f32 to vector<64x32xf32>
    %129 = arith.addf %128, %127 : vector<64x32xf32>
    %130 = arith.divf %128, %129 : vector<64x32xf32>
    %131 = arith.mulf %10, %130 : vector<64x32xf32>
    %132 = vector.broadcast %125 : vector<64x1xf32> to vector<64x32xf32>
    %133 = arith.mulf %132, %44 : vector<64x32xf32>
    %134 = arith.mulf %133, %131 : vector<64x32xf32>
    %c0_76 = arith.constant 0 : index
    %c0_77 = arith.constant 0 : index
    %135 = vector.load %arg13[%c0_76, %c0_77] : memref<32x16xf32, #tpu.memory_space<vmem>>, vector<32x16xf32>
    %cst_78 = arith.constant dense<0.000000e+00> : vector<64x16xf32>
    %136 = tpu.matmul %134, %135, %cst_78 {dimension_numbers = #tpu.dot_dimension_numbers<[1], [0], [0], [1], [0, 0, 1, 1], [], []>} : vector<64x32xf32>, vector<32x16xf32>, vector<64x16xf32> -> vector<64x16xf32>
    %c0_79 = arith.constant 0 : index
    %c0_80 = arith.constant 0 : index
    %137 = vector.load %arg14[%c0_79, %c0_80] : memref<1x16xf32, #tpu.memory_space<vmem>>, vector<1x16xf32>
    %138 = vector.broadcast %137 : vector<1x16xf32> to vector<64x16xf32>
    %139 = arith.addf %136, %138 : vector<64x16xf32>
    %c0_81 = arith.constant 0 : index
    %c0_82 = arith.constant 0 : index
    %140 = vector.load %arg15[%c0_81, %c0_82] : memref<64x16xf32, #tpu.memory_space<vmem>>, vector<64x16xf32>
    tpu.vector_store %arg15[%c0_81, %c0_82], %139 {strides = array<i32>} : memref<64x16xf32, #tpu.memory_space<vmem>>, vector<64x16xf32>,
    return
  }
  func.func @transform_0(%arg0: i32) -> (i32, i32) {
    %c0_i32 = arith.constant 0 : i32
    %c0_i32_0 = arith.constant 0 : i32
    return %arg0, %c0_i32 : i32, i32
  }
  func.func @transform_1(%arg0: i32) -> (i32, i32) {
    %c0_i32 = arith.constant 0 : i32
    %c0_i32_0 = arith.constant 0 : i32
    %c0_i32_1 = arith.constant 0 : i32
    return %c0_i32, %c0_i32_0 : i32, i32
  }
  func.func @transform_2(%arg0: i32) -> (i32, i32) {
    %c0_i32 = arith.constant 0 : i32
    %c0_i32_0 = arith.constant 0 : i32
    %c0_i32_1 = arith.constant 0 : i32
    return %c0_i32, %c0_i32_0 : i32, i32
  }
  func.func @transform_3(%arg0: i32) -> (i32, i32) {
    %c0_i32 = arith.constant 0 : i32
    %c0_i32_0 = arith.constant 0 : i32
    %c0_i32_1 = arith.constant 0 : i32
    return %c0_i32, %c0_i32_0 : i32, i32
  }
  func.func @transform_4(%arg0: i32) -> (i32, i32) {
    %c0_i32 = arith.constant 0 : i32
    %c0_i32_0 = arith.constant 0 : i32
    %c0_i32_1 = arith.constant 0 : i32
    return %c0_i32, %c0_i32_0 : i32, i32
  }
  func.func @transform_5(%arg0: i32) -> (i32, i32) {
    %c0_i32 = arith.constant 0 : i32
    %c0_i32_0 = arith.constant 0 : i32
    %c0_i32_1 = arith.constant 0 : i32
    return %c0_i32, %c0_i32_0 : i32, i32
  }
  func.func @transform_6(%arg0: i32) -> (i32, i32) {
    %c0_i32 = arith.constant 0 : i32
    %c0_i32_0 = arith.constant 0 : i32
    %c0_i32_1 = arith.constant 0 : i32
    return %c0_i32, %c0_i32_0 : i32, i32
  }
  func.func @transform_7(%arg0: i32) -> (i32, i32) {
    %c0_i32 = arith.constant 0 : i32
    %c0_i32_0 = arith.constant 0 : i32
    %c0_i32_1 = arith.constant 0 : i32
    return %c0_i32, %c0_i32_0 : i32, i32
  }
  func.func @transform_8(%arg0: i32) -> (i32, i32) {
    %c0_i32 = arith.constant 0 : i32
    %c0_i32_0 = arith.constant 0 : i32
    %c0_i32_1 = arith.constant 0 : i32
    return %c0_i32, %c0_i32_0 : i32, i32
  }
  func.func @transform_9(%arg0: i32) -> (i32, i32) {
    %c0_i32 = arith.constant 0 : i32
    %c0_i32_0 = arith.constant 0 : i32
    %c0_i32_1 = arith.constant 0 : i32
    return %c0_i32, %c0_i32_0 : i32, i32
  }
  func.func @transform_10(%arg0: i32) -> (i32, i32) {
    %c0_i32 = arith.constant 0 : i32
    %c0_i32_0 = arith.constant 0 : i32
    %c0_i32_1 = arith.constant 0 : i32
    return %c0_i32, %c0_i32_0 : i32, i32
  }
  func.func @transform_11(%arg0: i32) -> (i32, i32) {
    %c0_i32 = arith.constant 0 : i32
    %c0_i32_0 = arith.constant 0 : i32
    %c0_i32_1 = arith.constant 0 : i32
    return %c0_i32, %c0_i32_0 : i32, i32
  }
  func.func @transform_12(%arg0: i32) -> (i32, i32) {
    %c0_i32 = arith.constant 0 : i32
    %c0_i32_0 = arith.constant 0 : i32
    %c0_i32_1 = arith.constant 0 : i32
    return %c0_i32, %c0_i32_0 : i32, i32
  }
  func.func @transform_13(%arg0: i32) -> (i32, i32) {
    %c0_i32 = arith.constant 0 : i32
    %c0_i32_0 = arith.constant 0 : i32
    %c0_i32_1 = arith.constant 0 : i32
    return %c0_i32, %c0_i32_0 : i32, i32
  }
  func.func @transform_14(%arg0: i32) -> (i32, i32) {
    %c0_i32 = arith.constant 0 : i32
    %c0_i32_0 = arith.constant 0 : i32
    return %arg0, %c0_i32 : i32, i32
  }
}

</mosaic_0001>

<bundles_post_ra>
// kernel: tpu_custom_call.1
= control target key start
LH: loop header
LB: loop body
LE: loop exit
PB: predicated region body
PF: predicated region fallthrough
CT: control target
= control target key end

     0   :  { %vm64_vm0 = vcmask 130048   ;;  %vm308_vm1 = vcmask 261120   ;;  %v1894_v9 = vmov 0.0   ;;  %v1895_v24 = vmov 0.0|0.0   ;;  %s2363_s1 = inlined_call_operand.vmem [shape: f32[16,32], index: 1, kind: input, shape index: {}]   ;;  %s2364_s0 = inlined_call_operand.vmem [shape: f32[64,16], index: 0, kind: input, shape index: {}]   ;;  %s2365_s3 = inlined_call_operand.vmem [shape: f32[16,32], index: 3, kind: input, shape index: {}]   ;;  %s2366_s7 = inlined_call_operand.vmem [shape: f32[32,16], index: 7, kind: input, shape index: {}]   ;;  %s2367_s9 = inlined_call_operand.vmem [shape: f32[16,16], index: 9, kind: input, shape index: {}]   ;;  %s2368_s5 = inlined_call_operand.vmem [shape: f32[4,32], index: 5, kind: input, shape index: {}]   ;;  %s2369_s2 = inlined_call_operand.vmem [shape: f32[1,32], index: 2, kind: input, shape index: {}]   ;;  %s2370_s6 = inlined_call_operand.vmem [shape: f32[1,32], index: 6, kind: input, shape index: {}]   ;;  %s2371_s4 = inlined_call_operand.vmem [shape: f32[1,32], index: 4, kind: input, shape index: {}]   ;;  %s2372_s8 = inlined_call_operand.vmem [shape: f32[1,16], index: 8, kind: input, shape index: {}]   ;;  %s2373_s10 = inlined_call_operand.vmem [shape: f32[1,16], index: 10, kind: input, shape index: {}]   ;;  %s2374_s11 = inlined_call_operand.vmem [shape: f32[1,16], index: 11, kind: input, shape index: {}]   ;;  %s2375_s12 = inlined_call_operand.vmem [shape: f32[32,16], index: 12, kind: input, shape index: {}]   ;;  %s2376_s13 = inlined_call_operand.vmem [shape: f32[1,16], index: 13, kind: input, shape index: {}]   ;;  %s2377_s14 = inlined_call_operand.vmem [shape: f32[64,16], index: 14, kind: output, shape index: {}]  }
   0x1   :  { %v55_v0 = vld [vmem:[%s2363_s1] sm:$0xff]  ;;  %v56_v1 = vld [vmem:[%s2363_s1 + $0x8] sm:$0xff]  ;;  %v49_v7 = vld [vmem:[%s2364_s0 + $0x10] sm:$0xff]  ;;  %309 = vst.msk [vmem:[#allocation2] sm:$0xff] %vm308_vm1, %v1894_v9  ;;  %vm1896_vm2 = vmmov 0   ;;  %v337_v25 = vlaneseq }
   0x2   :  { %v47_v2 = vld [vmem:[%s2364_s0] sm:$0xff]  ;;  %v1777_v3 = vpack.c.bf16 %v56_v1, %v55_v0  ;;  %v48_v5 = vld [vmem:[%s2364_s0 + $0x8] sm:$0xff]  ;;  %v50_v8 = vld [vmem:[%s2364_s0 + $0x18] sm:$0xff]  ;;  %310 = vst.msk [vmem:[#allocation2 + $0x8] sm:$0xff] %vm308_vm1, %v1894_v9 }
   0x3   :  { %1653 = vmatprep.mubr.msk.f32.mxu0 %vm64_vm0, %v47_v2  ;;  %v51_v4 = vld [vmem:[%s2364_s0 + $0x20] sm:$0xff]  ;;  %v52_v6 = vld [vmem:[%s2364_s0 + $0x28] sm:$0xff]  ;;  %311 = vst.msk [vmem:[#allocation2 + $0x10] sm:$0xff] %vm308_vm1, %v1894_v9  ;;  %v53_v10 = vld [vmem:[%s2364_s0 + $0x30] sm:$0xff]  ;;  %v338_v26 = vshrl.u32 %v337_v25, 7 }
   0x4   :  { %1778 = vmatprep.subr.bf16.mxu0 %v1777_v3  ;;  %1825 = vmatprep.subr.bf16.mxu1 %v1777_v3  ;;  %v54_v11 = vld [vmem:[%s2364_s0 + $0x38] sm:$0xff]  ;;  %v194_v12 = vld [vmem:[%s2365_s3] sm:$0xff]  ;;  %v195_v13 = vld [vmem:[%s2365_s3 + $0x8] sm:$0xff] }
   0x5   :  { %1780 = vmatpush3.bf16.msra.mxu0 %v1777_v3  ;;  %1826 = vmatpush3.bf16.msra.mxu1 %v1777_v3  ;;  %v476_v14 = vld [vmem:[%s2366_s7] sm:$0xff]  ;;  %v1781_v15 = vpack.c.bf16 %v195_v13, %v194_v12  ;;  %v477_v16 = vld [vmem:[%s2366_s7 + $0x8] sm:$0xff]  ;;  %v478_v17 = vld [vmem:[%s2366_s7 + $0x10] sm:$0xff]  ;;  %v339_v27 = vsub.s32 0, %v338_v26  ;;  %v360_v31 = vsub.s32 1, %v338_v26  ;;  %v381_v37 = vsub.s32 2, %v338_v26 }
   0x6   :  { %1659 = vmatprep.mubr.msk.f32.mxu1 %vm64_vm0, %v51_v4  ;;  %v479_v18 = vld [vmem:[%s2366_s7 + $0x18] sm:$0xff]  ;;  %v1785_v19 = vpack.c.bf16 %v477_v16, %v476_v14  ;;  %v616_v21 = vld [vmem:[%s2367_s9] sm:$0xff]  ;;  %v617_v22 = vld [vmem:[%s2367_s9 + $0x8] sm:$0xff]  ;;  %v402_v52 = vsub.s32 3, %v338_v26 }
   0x7   :  { %v1789_v20 = vpack.c.bf16 %v479_v18, %v478_v17  ;;  %1782 = vmatprep.subr.bf16.mxu1 %v1781_v15  ;;  %v2041_v23 = vpack.c.bf16 %v617_v22, %v616_v21  ;;  %v320_v28 = vld [vmem:[%s2368_s5] sm:$0xf] }
   0x8   :  { %1654 = vmatmul.mubr.msk.f32.vlgmr.msra.gmra.mrb[0].mxu0 %vm64_vm0, %v48_v5  ;;  %1660 = vmatmul.mubr.msk.f32.vlgmr.msra.gmra.mrb[0].mxu1 %vm64_vm0, %v52_v6  ;;  %v2064_v29 = vrot.slane %v320_v28, %v339_v27  ;;  %v329_v30 = vld [vmem:[#allocation2] sm:$0xff]  ;;  %v2077_v36 = vrot.slane %v320_v28, %v360_v31  ;;  %v2086_v50 = vrot.slane %v320_v28, %v381_v37 }
   0x9   :  { %1656 = vmatprep.mubr.msk.f32.mxu0 %vm64_vm0, %v49_v7  ;;  %1662 = vmatprep.mubr.msk.f32.mxu1 %vm64_vm0, %v53_v10  ;;  %v2070_v33 = vld [vmem:[%s2369_s2] ss:$0 sm:$0xff]  ;;  %v330_v35 = vld [vmem:[#allocation2 + $0x8] sm:$0xff]  ;;  %v2100_v61 = vrot.slane %v320_v28, %v402_v52 }
   0xa   :  { %1784 = vmatpush3.bf16.msra.mxu1 %v1781_v15  ;;  %1786 = vmatprep.subr.bf16.mxu0 %v1785_v19  ;;  %v341_v32 = vmul.f32 %v2064_v29, %v329_v30  ;;  %v2075_v34 = vld [vmem:[%s2370_s6] ss:$0 sm:$0xff]  ;;  %v342_v44 = vmul.f32 %v2064_v29, %v330_v35  ;;  %v331_v48 = vld [vmem:[#allocation2 + $0x10] sm:$0xff]  ;;  %v362_v49 = vmul.f32 %v2077_v36, %v330_v35 }
   0xb   :  { %1788 = vmatpush3.bf16.msra.mxu0 %v1785_v19  ;;  %1793 = vmatprep.subr.bf16.mxu1 %v1895_v24  ;;  %v363_v56 = vmul.f32 %v2077_v36, %v331_v48  ;;  %v383_v59 = vmul.f32 %v2086_v50, %v331_v48  ;;  %v343_v60 = vmul.f32 %v2064_v29, %v331_v48 }
   0xc   :  { %1657 = vmatmul.mubr.msk.f32.gmra.mrb[2].mxu0 %vm64_vm0, %v50_v8  ;;  %1663 = vmatmul.mubr.msk.f32.gmra.mrb[2].mxu1 %vm64_vm0, %v54_v11  ;;  %v349_v45 = vadd.f32 %v2075_v34, %v341_v32  ;;  %v350_v55 = vadd.f32 %v2075_v34, %v342_v44 }
   0xd   :  { %1669 = vmatprep.mubr.msk.f32.mxu1 %vm64_vm0, %v47_v2  ;;  %1790 = vmatprep.subr.bf16.mxu0 %v1789_v20  ;;  %v351_v1 = vadd.f32 %v2075_v34, %v343_v60 }
   0xe   :  { %v370_v58 = vadd.f32 %v362_v49, %v349_v45  ;;  %v371_v62 = vadd.f32 %v363_v56, %v350_v55 }
   0xf   :  { %1792 = vmatpush3.bf16.msra.mxu0 %v1789_v20 }
  0x10   :  { %1670 = vmatmul.mubr.msk.f32.vlgmr.msra.gmra.mrb[4].mxu1 %vm64_vm0, %v48_v5  ;;  %1805 = vmatprep.subr.bf16.mxu0 %v1895_v24  ;;  %v391_v63 = vadd.f32 %v383_v59, %v370_v58 }
  0x11   :  { %1672 = vmatprep.mubr.msk.f32.mxu1 %vm64_vm0, %v49_v7  ;;  %1795 = vmatpush3.bf16.msra.mxu1 %v2041_v23 }
  0x12   :  { %1796 = vmatprep.subr.bf16.mxu1 %v1895_v24 }
  0x14   :  { %1673 = vmatmul.mubr.msk.f32.gmra.mrb[6].mxu1 %vm64_vm0, %v50_v8 }
  0x15   :  { %1675 = vmatprep.mubr.msk.f32.mxu1 %vm64_vm0, %v51_v4 }
  0x18   :  { %1676 = vmatmul.mubr.msk.f32.gmra.mrb[8].mxu1 %vm64_vm0, %v52_v6 }
  0x19   :  { %1678 = vmatprep.mubr.msk.f32.mxu1 %vm64_vm0, %v53_v10 }
  0x1c   :  { %1679 = vmatmul.mubr.msk.f32.gmra.mrb[10].mxu1 %vm64_vm0, %v54_v11 }
  0x1d   :  { %1705 = vmatprep.mubr.msk.f32.mxu1 %vm1896_vm2, %v1894_v9 }
  0x20   :  { %1706 = vmatmul.mubr.f32.vlgmr.msra.gmra.mrb[12].mxu1 %v1894_v9 }
  0x21   :  { %1798 = vmatpush3.bf16.msra.mxu1 %v2041_v23  ;;  %1712 = vmatprep.mubr.msk.f32.mxu1 %vm1896_vm2, %v1894_v9 }
  0x22   :  { %1799 = vmatprep.subr.bf16.mxu1 %v1895_v24 }
  0xdb   :  { %v1655_v38 = vpop.f32.mrb[0].mxu0  ;;  %v1661_v39 = vpop.f32.mrb[0].mxu1 }
  0xdc   :  { %v161_v40 = vadd.f32 %v1655_v38, %v2070_v33  ;;  %v155_v41 = vpop.f32.mrb[1].mxu0  ;;  %v181_v42 = vadd.f32 %v1661_v39, %v2070_v33  ;;  %v175_v43 = vpop.f32.mrb[1].mxu1 }
  0xdd   :  { %v156_v46 = vadd.f32 %v2070_v33, %v155_v41  ;;  %v176_v47 = vadd.f32 %v2070_v33, %v175_v43 }
  0xde   :  { %313 = vst.msk [vmem:[#allocation2 + $0x20] sm:$0xff] %vm308_vm1, %v161_v40  ;;  %317 = vst.msk [vmem:[#allocation2 + $0x40] sm:$0xff] %vm308_vm1, %v181_v42 }
  0xdf   :  { %312 = vst.msk [vmem:[#allocation2 + $0x18] sm:$0xff] %vm308_vm1, %v156_v46  ;;  %v1658_v51 = vpop.f32.mrb[2].mxu0  ;;  %316 = vst.msk [vmem:[#allocation2 + $0x38] sm:$0xff] %vm308_vm1, %v176_v47 }
  0xe0   :  { %v171_v53 = vadd.f32 %v1658_v51, %v2070_v33  ;;  %v165_v54 = vpop.f32.mrb[3].mxu0 }
  0xe1   :  { %v166_v57 = vadd.f32 %v2070_v33, %v165_v54 }
  0xe2   :  { %315 = vst.msk [vmem:[#allocation2 + $0x30] sm:$0xff] %vm308_vm1, %v171_v53 }
  0xe3   :  { %314 = vst.msk [vmem:[#allocation2 + $0x28] sm:$0xff] %vm308_vm1, %v166_v57 }
  0xe5   :  { %v333_v0 = vld [vmem:[#allocation2 + $0x20] sm:$0xff] }
  0xe6   :  { %v332_v2 = vld [vmem:[#allocation2 + $0x18] sm:$0xff]  ;;  %v345_v3 = vmul.f32 %v2064_v29, %v333_v0  ;;  %v405_v8 = vmul.f32 %v2100_v61, %v333_v0  ;;  %v385_v10 = vmul.f32 %v2086_v50, %v333_v0  ;;  %v365_v17 = vmul.f32 %v2077_v36, %v333_v0 }
  0xe7   :  { %v384_v4 = vmul.f32 %v2086_v50, %v332_v2  ;;  %v404_v5 = vmul.f32 %v2100_v61, %v332_v2  ;;  %v364_v6 = vmul.f32 %v2077_v36, %v332_v2  ;;  %v344_v7 = vmul.f32 %v2064_v29, %v332_v2  ;;  %v2121_v26 = vld [vmem:[#allocation2 + $0x38] sm:$0xff] }
  0xe8   :  { %v353_v19 = vadd.f32 %v2075_v34, %v345_v3  ;;  %v408_v39 = vmul.f32 %v2100_v61, %v2121_v26 }
  0xe9   :  { %v412_v11 = vadd.f32 %v404_v5, %v391_v63  ;;  %v392_v12 = vadd.f32 %v384_v4, %v371_v62  ;;  %v372_v13 = vadd.f32 %v364_v6, %v351_v1  ;;  %v2110_v14 = vld [vmem:[#allocation2 + $0x30] sm:$0xff]  ;;  %v352_v15 = vadd.f32 %v2075_v34, %v344_v7  ;;  %v1664_v4 = vpop.f32.mrb[2].mxu1 }
  0xea   :  { %v2113_v16 = vld [vmem:[#allocation2 + $0x28] sm:$0xff]  ;;  %v407_v18 = vmul.f32 %v2100_v61, %v2110_v14  ;;  %v387_v31 = vmul.f32 %v2086_v50, %v2110_v14  ;;  %v191_v5 = vadd.f32 %v1664_v4, %v2070_v33  ;;  %v185_v6 = vpop.f32.mrb[3].mxu1 }
  0xeb   :  { %v1538_v20 = vmul.f32 -1.442695, %v412_v11  ;;  %v413_v21 = vadd.f32 %v405_v8, %v392_v12  ;;  %v393_v22 = vadd.f32 %v385_v10, %v372_v13  ;;  %v406_v25 = vmul.f32 %v2100_v61, %v2113_v16  ;;  %v2159_v10 = vpop.f32.mrb[4].mxu1 }
  0xec   :  { %v373_v27 = vadd.f32 %v365_v17, %v352_v15  ;;  %v386_v28 = vmul.f32 %v2086_v50, %v2113_v16  ;;  %v366_v30 = vmul.f32 %v2077_v36, %v2113_v16  ;;  %v186_v7 = vadd.f32 %v2070_v33, %v185_v6  ;;  %319 = vst.msk [vmem:[#allocation2 + $0x50] sm:$0xff] %vm308_vm1, %v191_v5  ;;  %v2164_v13 = vpop.f32.mrb[5].mxu1 }
  0xed   :  { %1830 = vpow2.f32 %v1538_v20  ;;  %v1539_v32 = vmul.f32 -1.442695, %v413_v21  ;;  %v414_v35 = vadd.f32 %v406_v25, %v393_v22  ;;  %v346_v8 = vmul.f32 %v2064_v29, %v2113_v16  ;;  %v357_v16 = vld [vmem:[#allocation2 + $0x40] sm:$0xff] }
  0xee   :  { %v394_v37 = vadd.f32 %v386_v28, %v373_v27  ;;  %v374_v38 = vadd.f32 %v366_v30, %v353_v19  ;;  %318 = vst.msk [vmem:[#allocation2 + $0x48] sm:$0xff] %vm308_vm1, %v186_v7  ;;  %v367_v12 = vmul.f32 %v2077_v36, %v2110_v14  ;;  %v347_v15 = vmul.f32 %v2064_v29, %v2110_v14 }
  0xef   :  { %1832 = vpow2.f32 %v1539_v32  ;;  %v1540_v40 = vmul.f32 -1.442695, %v414_v35  ;;  %v388_v17 = vmul.f32 %v2086_v50, %v2121_v26  ;;  %v368_v20 = vmul.f32 %v2077_v36, %v2121_v26 }
  0xf0   :  { %v415_v41 = vadd.f32 %v407_v18, %v394_v37  ;;  %v395_v42 = vadd.f32 %v387_v31, %v374_v38  ;;  %v348_v18 = vmul.f32 %v2064_v29, %v2121_v26  ;;  %v355_v19 = vadd.f32 %v2075_v34, %v347_v15 }
  0xf1   :  { %1834 = vpow2.f32 %v1540_v40  ;;  %v409_v25 = vmul.f32 %v2100_v61, %v357_v16  ;;  %v389_v31 = vmul.f32 %v2086_v50, %v357_v16  ;;  %v369_v32 = vmul.f32 %v2077_v36, %v357_v16 }
  0xf2   :  { %v1541_v43 = vmul.f32 -1.442695, %v415_v41  ;;  %v416_v44 = vadd.f32 %v408_v39, %v395_v42  ;;  %v356_v14 = vadd.f32 %v2075_v34, %v348_v18  ;;  %v376_v28 = vadd.f32 %v368_v20, %v355_v19  ;;  %v2188_v39 = vld [vmem:[%s2371_s4] ss:$0 sm:$0xff] }
  0xf3   :  { %v399_v38 = vld [vmem:[#allocation2 + $0x50] sm:$0xff] }
  0xf4   :  { %1836 = vpow2.f32 %v1541_v43  ;;  %v1542_v45 = vmul.f32 -1.442695, %v416_v44  ;;  %v411_v42 = vmul.f32 %v2100_v61, %v399_v38 }
  0xf5   :  { %v378_v30 = vld [vmem:[#allocation2 + $0x48] sm:$0xff] }
  0xf6   :  { %1838 = vpow2.f32 %v1542_v45  ;;  %v410_v37 = vmul.f32 %v2100_v61, %v378_v30  ;;  %v390_v26 = vmul.f32 %v2086_v50, %v378_v30 }
  0xf7   :  { %v1831_v46 = vpop.eup %1830 }
  0xf8   :  { %v444_v47 = vadd.f32 1.0, %v1831_v46 }
  0xf9   :  { %v1833_v48 = vpop.eup %1832 }
  0xfa   :  { %1840 = vrcp.f32 %v444_v47  ;;  %v445_v49 = vadd.f32 1.0, %v1833_v48 }
  0xfb   :  { %v1835_v51 = vpop.eup %1834 }
  0xfc   :  { %1842 = vrcp.f32 %v445_v49  ;;  %v446_v52 = vadd.f32 1.0, %v1835_v51 }
  0xfe   :  { %v1837_v53 = vpop.eup %1836  ;;  %1844 = vrcp.f32 %v446_v52 }
  0xff   :  { %v447_v54 = vadd.f32 1.0, %v1837_v53 }
 0x100   :  { %v1839_v55 = vpop.eup %1838 }
 0x101   :  { %1846 = vrcp.f32 %v447_v54  ;;  %v448_v56 = vadd.f32 1.0, %v1839_v55 }
 0x103   :  { %1848 = vrcp.f32 %v448_v56 }
 0x104   :  { %v1841_v57 = vpop.eup %1840 }
 0x105   :  { %v2131_v58 = vmul.f32 %v1841_v57, %v412_v11  ;;  %v354_v11 = vadd.f32 %v2075_v34, %v346_v8  ;;  %v1546_v8 = vld [vmem:[%s2372_s8] ss:$0 sm:$0xff] }
 0x106   :  { %v1843_v59 = vpop.eup %1842 }
 0x107   :  { %1689 = vmatprep.mubr.msk.f32.mxu0 %vm308_vm1, %v2131_v58  ;;  %v2135_v60 = vmul.f32 %v1843_v59, %v413_v21  ;;  %v375_v33 = vadd.f32 %v367_v12, %v354_v11  ;;  %v2175_v21 = vpop.f32.mrb[6].mxu1  ;;  %v1555_v12 = vld [vmem:[%s2373_s10] ss:$0 sm:$0xff] }
 0x108   :  { %v1845_v62 = vpop.eup %1844  ;;  %v2179_v27 = vpop.f32.mrb[7].mxu1 }
 0x109   :  { %1690 = vmatmul.mubr.msk.f32.vlgmr.msra.gmra.mrb[4].mxu0 %vm308_vm1, %v2135_v60  ;;  %v2139_v63 = vmul.f32 %v1845_v62, %v414_v35  ;;  %v396_v22 = vadd.f32 %v388_v17, %v375_v33  ;;  %v397_v35 = vadd.f32 %v389_v31, %v376_v28  ;;  %v1677_v34 = vpop.f32.mrb[8].mxu1 }
 0x10a   :  { %1807 = vmatpush3.bf16.msra.mxu0 %v2041_v23  ;;  %v2192_v43 = vadd.f32 %v1677_v34, %v2188_v39  ;;  %v2194_v36 = vpop.f32.mrb[9].mxu1 }
 0x10b   :  { %v1847_v0 = vpop.eup %1846  ;;  %1692 = vmatprep.mubr.msk.f32.mxu0 %vm308_vm1, %v2139_v63  ;;  %1811 = vmatprep.subr.bf16.mxu0 %v1895_v24  ;;  %v417_v29 = vadd.f32 %v409_v25, %v396_v22  ;;  %v1680_v46 = vpop.f32.mrb[10].mxu1 }
 0x10c   :  { %v2145_v1 = vmul.f32 %v1847_v0, %v415_v41  ;;  %v377_v41 = vadd.f32 %v369_v32, %v356_v14  ;;  %v2197_v48 = vadd.f32 %v1680_v46, %v2188_v39  ;;  %v299_v49 = vpop.f32.mrb[11].mxu1 }
 0x10d   :  { %v1849_v2 = vpop.eup %1848  ;;  %v1543_v40 = vmul.f32 -1.442695, %v417_v29  ;;  %v2200_v51 = vadd.f32 %v2188_v39, %v299_v49  ;;  %v711_v6 = vpop.f32.mrb[12].mxu1 }
 0x10e   :  { %1693 = vmatmul.mubr.msk.f32.gmra.mrb[6].mxu0 %vm308_vm1, %v2145_v1  ;;  %v2149_v3 = vmul.f32 %v1849_v2, %v416_v44  ;;  %v418_v44 = vadd.f32 %v410_v37, %v397_v35  ;;  %v398_v45 = vadd.f32 %v390_v26, %v377_v41  ;;  %v1707_v7 = vpop.f32.mrb[13].mxu1 }
 0x10f   :  { %1850 = vpow2.f32 %v1543_v40 }
 0x110   :  { %1695 = vmatprep.mubr.msk.f32.mxu0 %vm308_vm1, %v2149_v3  ;;  %v1544_v50 = vmul.f32 -1.442695, %v418_v44  ;;  %v419_v47 = vadd.f32 %v411_v42, %v398_v45 }
 0x112   :  { %v1545_v52 = vmul.f32 -1.442695, %v419_v47  ;;  %1852 = vpow2.f32 %v1544_v50 }
 0x114   :  { %1854 = vpow2.f32 %v1545_v52 }
 0x119   :  { %v1851_v61 = vpop.eup %1850 }
 0x11a   :  { %v449_v53 = vadd.f32 1.0, %v1851_v61 }
 0x11c   :  { %1856 = vrcp.f32 %v449_v53  ;;  %v1853_v54 = vpop.eup %1852 }
 0x11d   :  { %v450_v56 = vadd.f32 1.0, %v1853_v54 }
 0x11e   :  { %v1855_v55 = vpop.eup %1854 }
 0x11f   :  { %v451_v57 = vadd.f32 1.0, %v1855_v55  ;;  %1858 = vrcp.f32 %v450_v56 }
 0x121   :  { %1860 = vrcp.f32 %v451_v57 }
 0x126   :  { %v1857_v59 = vpop.eup %1856 }
 0x127   :  { %v2202_v62 = vmul.f32 %v1857_v59, %v417_v29  ;;  %v2235_v29 = vld [vmem:[%s2374_s11] ss:$0 sm:$0xff] }
 0x129   :  { %1696 = vmatmul.mubr.msk.f32.gmra.mrb[8].mxu0 %vm308_vm1, %v2202_v62  ;;  %v1859_v0 = vpop.eup %1858 }
 0x12a   :  { %v2206_v4 = vmul.f32 %v1859_v0, %v418_v44 }
 0x12b   :  { %v1861_v2 = vpop.eup %1860 }
 0x12c   :  { %v2208_v5 = vmul.f32 %v1861_v2, %v419_v47  ;;  %1698 = vmatprep.mubr.msk.f32.mxu0 %vm308_vm1, %v2206_v4 }
 0x12e   :  { %1699 = vmatmul.mubr.msk.f32.gmra.mrb[10].mxu0 %vm308_vm1, %v2208_v5 }
 0x12f   :  { %1733 = vmatprep.mubr.msk.f32.mxu0 %vm1896_vm2, %v1894_v9 }
 0x1dc   :  { %v1691_v11 = vpop.f32.mrb[4].mxu0 }
 0x1dd   :  { %v583_v15 = vadd.f32 %v1691_v11, %v1546_v8  ;;  %v577_v33 = vpop.f32.mrb[5].mxu0 }
 0x1de   :  { %v578_v17 = vadd.f32 %v1546_v8, %v577_v33 }
 0x1df   :  { %v626_v18 = vmul.f32 %v1555_v12, %v583_v15 }
 0x1e0   :  { %v625_v16 = vmul.f32 %v1555_v12, %v578_v17 }
 0x1e1   :  { %634 = vst.msk [vmem:[#allocation3 + $0x8] sm:$0xff] %vm64_vm0, %v626_v18  ;;  %v1694_v19 = vpop.f32.mrb[6].mxu0 }
 0x1e2   :  { %633 = vst.msk [vmem:[#allocation3] sm:$0xff] %vm64_vm0, %v625_v16  ;;  %v593_v20 = vadd.f32 %v1694_v19, %v1546_v8  ;;  %v587_v22 = vpop.f32.mrb[7].mxu0 }
 0x1e3   :  { %v588_v25 = vadd.f32 %v1546_v8, %v587_v22 }
 0x1e4   :  { %v628_v14 = vmul.f32 %v1555_v12, %v593_v20 }
 0x1e5   :  { %v627_v28 = vmul.f32 %v1555_v12, %v588_v25 }
 0x1e6   :  { %636 = vst.msk [vmem:[#allocation3 + $0x18] sm:$0xff] %vm64_vm0, %v628_v14 }
 0x1e7   :  { %635 = vst.msk [vmem:[#allocation3 + $0x10] sm:$0xff] %vm64_vm0, %v627_v28 }
 0x1e8   :  { %v717_v52 = vld [vmem:[#allocation3 + $0x8] sm:$0xff] }
 0x1e9   :  { %v641_v30 = vld [vmem:[#allocation3] sm:$0xff] }
 0x1ea   :  { %v712_v31 = vadd.f32 %v711_v6, %v641_v30 }
 0x1ec   :  { %715 = vst.msk [vmem:[#allocation3] sm:$0xff] %vm64_vm0, %v712_v31  ;;  %1713 = vmatmul.mubr.msk.f32.vlgmr.msra.gmra.mrb[14].mxu1 %vm64_vm0, %v712_v31  ;;  %v1367_v31 = vld [vmem:[%s2375_s12] sm:$0xff] }
 0x1ed   :  { %1801 = vmatpush3.bf16.msra.mxu1 %v2041_v23  ;;  %1719 = vmatprep.mubr.msk.f32.mxu1 %vm1896_vm2, %v1894_v9 }
 0x1ee   :  { %1802 = vmatprep.subr.bf16.mxu1 %v1895_v24  ;;  %v793_v59 = vld [vmem:[#allocation3 + $0x10] sm:$0xff] }
 0x1f3   :  { %v1248_v32 = vld [vmem:[#allocation3] sm:$0xff] }
 0x1f4   :  { %v1263_v35 = vmul.f32 %v2235_v29, %v1248_v32  ;;  %v1368_v32 = vld [vmem:[%s2375_s12 + $0x8] sm:$0xff] }
 0x1f6   :  { %v1271_v37 = vsel %vm64_vm0, %v1263_v35, 0.0  ;;  %v1817_v35 = vpack.c.bf16 %v1368_v32, %v1367_v31 }
 0x1f7   :  { %1272 = vadd.xlane.f32.xlu0 %v1271_v37  ;;  %v275_v37 = vadd.f32 %v2159_v10, %v2188_v39 }
 0x1fc   :  { %v1697_v26 = vpop.f32.mrb[8].mxu0 }
 0x1fd   :  { %v603_v38 = vadd.f32 %v1697_v26, %v1546_v8  ;;  %v597_v34 = vpop.f32.mrb[9].mxu0  ;;  %v280_v26 = vadd.f32 %v2188_v39, %v2179_v27 }
 0x1fe   :  { %v598_v40 = vadd.f32 %v1546_v8, %v597_v34  ;;  %v285_v34 = vadd.f32 %v2175_v21, %v2188_v39 }
 0x1ff   :  { %v630_v41 = vmul.f32 %v1555_v12, %v603_v38  ;;  %v1565_v38 = vmul.f32 -1.442695, %v275_v37 }
 0x200   :  { %v629_v42 = vmul.f32 %v1555_v12, %v598_v40  ;;  %v1566_v40 = vmul.f32 -1.442695, %v280_v26 }
 0x201   :  { %638 = vst.msk [vmem:[#allocation3 + $0x28] sm:$0xff] %vm64_vm0, %v630_v41  ;;  %v1700_v44 = vpop.f32.mrb[10].mxu0  ;;  %v290_v41 = vadd.f32 %v2188_v39, %v2194_v36 }
 0x202   :  { %637 = vst.msk [vmem:[#allocation3 + $0x20] sm:$0xff] %vm64_vm0, %v629_v42  ;;  %v613_v45 = vadd.f32 %v1700_v44, %v1546_v8  ;;  %v607_v50 = vpop.f32.mrb[11].mxu0  ;;  %v1567_v42 = vmul.f32 -1.442695, %v285_v34 }
 0x203   :  { %v608_v46 = vadd.f32 %v1546_v8, %v607_v50 }
 0x204   :  { %v632_v47 = vmul.f32 %v1555_v12, %v613_v45 }
 0x205   :  { %v631_v49 = vmul.f32 %v1555_v12, %v608_v46  ;;  %v869_v12 = vld [vmem:[#allocation3 + $0x18] sm:$0xff] }
 0x206   :  { %640 = vst.msk [vmem:[#allocation3 + $0x38] sm:$0xff] %vm64_vm0, %v632_v47 }
 0x207   :  { %639 = vst.msk [vmem:[#allocation3 + $0x30] sm:$0xff] %vm64_vm0, %v631_v49 }
 0x209   :  { %v945_v19 = vld [vmem:[#allocation3 + $0x20] sm:$0xff] }
 0x2bf   :  { %v787_v61 = vpop.f32.mrb[14].mxu1 }
 0x2c0   :  { %v788_v53 = vadd.f32 %v787_v61, %v717_v52  ;;  %v1714_v54 = vpop.f32.mrb[15].mxu1 }
 0x2c1   :  { %v1370_v54 = vld [vmem:[%s2375_s12 + $0x18] sm:$0xff] }
 0x2c2   :  { %791 = vst.msk [vmem:[#allocation3 + $0x8] sm:$0xff] %vm64_vm0, %v788_v53  ;;  %1720 = vmatmul.mubr.msk.f32.vlgmr.msra.gmra.mrb[16].mxu1 %vm64_vm0, %v788_v53  ;;  %v1369_v53 = vld [vmem:[%s2375_s12 + $0x10] sm:$0xff] }
 0x2c3   :  { %1804 = vmatpush3.bf16.msra.mxu1 %v2041_v23  ;;  %1726 = vmatprep.mubr.msk.f32.mxu1 %vm1896_vm2, %v1894_v9 }
 0x2c4   :  { %1808 = vmatprep.subr.bf16.mxu1 %v1895_v24 }
 0x2c9   :  { %v1249_v55 = vld [vmem:[#allocation3 + $0x8] sm:$0xff] }
 0x2ca   :  { %v1264_v56 = vmul.f32 %v2235_v29, %v1249_v55 }
 0x2cc   :  { %v1274_v57 = vsel %vm64_vm0, %v1264_v56, 0.0  ;;  %v1021_v56 = vld [vmem:[#allocation3 + $0x28] sm:$0xff] }
 0x2cd   :  { %1275 = vadd.xlane.f32.xlu0 %v1274_v57 }
 0x395   :  { %v863_v0 = vpop.f32.mrb[16].mxu1 }
 0x396   :  { %v864_v2 = vadd.f32 %v863_v0, %v793_v59  ;;  %v1721_v6 = vpop.f32.mrb[17].mxu1 }
 0x398   :  { %867 = vst.msk [vmem:[#allocation3 + $0x10] sm:$0xff] %vm64_vm0, %v864_v2  ;;  %1727 = vmatmul.mubr.msk.f32.vlgmr.msra.gmra.mrb[18].mxu1 %vm64_vm0, %v864_v2  ;;  %v1821_v2 = vpack.c.bf16 %v1370_v54, %v1369_v53 }
 0x399   :  { %1810 = vmatpush3.bf16.msra.mxu1 %v2041_v23  ;;  %1740 = vmatprep.mubr.msk.f32.mxu1 %vm1896_vm2, %v1894_v9 }
 0x39a   :  { %1814 = vmatprep.subr.bf16.mxu1 %v1895_v24 }
 0x39f   :  { %v1250_v7 = vld [vmem:[#allocation3 + $0x10] sm:$0xff] }
 0x3a0   :  { %v1265_v8 = vmul.f32 %v2235_v29, %v1250_v7 }
 0x3a2   :  { %v1277_v11 = vsel %vm64_vm0, %v1265_v8, 0.0 }
 0x3a3   :  { %1278 = vadd.xlane.f32.xlu1 %v1277_v11 }
 0x430   :  { %v1279_v8 = vpop.xlane.xlu1 %1278 }
 0x46b   :  { %v939_v15 = vpop.f32.mrb[18].mxu1 }
 0x46c   :  { %v940_v33 = vadd.f32 %v939_v15, %v869_v12  ;;  %v1728_v17 = vpop.f32.mrb[19].mxu1  ;;  %v1353_v15 = vmul.f32 %v1279_v8, %v2139_v63 }
 0x46e   :  { %943 = vst.msk [vmem:[#allocation3 + $0x18] sm:$0xff] %vm64_vm0, %v940_v33  ;;  %1734 = vmatmul.mubr.msk.f32.vlgmr.msra.gmra.mrb[12].mxu0 %vm64_vm0, %v940_v33 }
 0x46f   :  { %1813 = vmatpush3.bf16.msra.mxu0 %v2041_v23  ;;  %1747 = vmatprep.mubr.msk.f32.mxu0 %vm1896_vm2, %v1894_v9 }
 0x470   :  { %1818 = vmatprep.subr.bf16.mxu0 %v1817_v35 }
 0x475   :  { %v1251_v24 = vld [vmem:[#allocation3 + $0x18] sm:$0xff] }
 0x476   :  { %v1266_v18 = vmul.f32 %v2235_v29, %v1251_v24 }
 0x478   :  { %v1280_v16 = vsel %vm64_vm0, %v1266_v18, 0.0 }
 0x479   :  { %1281 = vadd.xlane.f32.xlu1 %v1280_v16 }
 0x506   :  { %v1282_v33 = vpop.xlane.xlu1 %1281 }
 0x541   :  { %v1015_v20 = vpop.f32.mrb[12].mxu0 }
 0x542   :  { %v1016_v22 = vadd.f32 %v1015_v20, %v945_v19  ;;  %v1735_v25 = vpop.f32.mrb[13].mxu0 }
 0x544   :  { %1019 = vst.msk [vmem:[#allocation3 + $0x20] sm:$0xff] %vm64_vm0, %v1016_v22  ;;  %1741 = vmatmul.mubr.msk.f32.vlgmr.msra.gmra.mrb[20].mxu1 %vm64_vm0, %v1016_v22  ;;  %v1354_v22 = vmul.f32 %v1282_v33, %v2145_v1  ;;  %v1569_v1 = vmul.f32 -1.442695, %v2192_v43 }
 0x545   :  { %1816 = vmatpush3.bf16.msra.mxu1 %v2041_v23  ;;  %1754 = vmatprep.mubr.msk.f32.mxu1 %vm1896_vm2, %v1894_v9  ;;  %v270_v23 = vadd.f32 %v2188_v39, %v2164_v13  ;;  %v1568_v13 = vmul.f32 -1.442695, %v290_v41  ;;  %v1273_v39 = vpop.xlane.xlu0 %1272 }
 0x546   :  { %v1351_v61 = vmul.f32 %v1273_v39, %v2131_v58  ;;  %v1570_v39 = vmul.f32 -1.442695, %v2200_v51 }
 0x547   :  { %v1564_v9 = vmul.f32 -1.442695, %v270_v23 }
 0x549   :  { %1862 = vpow2.f32 %v1564_v9  ;;  %v1276_v7 = vpop.xlane.xlu0 %1275 }
 0x54a   :  { %1864 = vpow2.f32 %v1565_v38  ;;  %v1352_v12 = vmul.f32 %v1276_v7, %v2135_v60 }
 0x54b   :  { %v1252_v14 = vld [vmem:[#allocation3 + $0x20] sm:$0xff]  ;;  %1866 = vpow2.f32 %v1566_v40  ;;  %v1097_v40 = vld [vmem:[#allocation3 + $0x30] sm:$0xff] }
 0x54c   :  { %v1267_v28 = vmul.f32 %v2235_v29, %v1252_v14  ;;  %1868 = vpow2.f32 %v1567_v42 }
 0x54d   :  { %1870 = vpow2.f32 %v1568_v13 }
 0x54e   :  { %v1283_v30 = vsel %vm64_vm0, %v1267_v28, 0.0 }
 0x54f   :  { %1284 = vadd.xlane.f32.xlu0 %v1283_v30 }
 0x553   :  { %v1863_v44 = vpop.eup %1862 }
 0x554   :  { %v1319_v10 = vadd.f32 1.0, %v1863_v44  ;;  %v1865_v45 = vpop.eup %1864  ;;  %v1572_v44 = vld [vmem:[%s2376_s13] ss:$0 sm:$0xff] }
 0x555   :  { %v1867_v50 = vpop.eup %1866  ;;  %v1320_v27 = vadd.f32 1.0, %v1865_v45 }
 0x556   :  { %1872 = vrcp.f32 %v1319_v10  ;;  %v1869_v46 = vpop.eup %1868  ;;  %v1321_v47 = vadd.f32 1.0, %v1867_v50 }
 0x557   :  { %v1871_v49 = vpop.eup %1870  ;;  %1874 = vrcp.f32 %v1320_v27  ;;  %v1322_v21 = vadd.f32 1.0, %v1869_v46 }
 0x558   :  { %1876 = vrcp.f32 %v1321_v47  ;;  %v1323_v52 = vadd.f32 1.0, %v1871_v49 }
 0x559   :  { %1878 = vrcp.f32 %v1322_v21 }
 0x55a   :  { %1880 = vrcp.f32 %v1323_v52 }
 0x55b   :  { %1882 = vpow2.f32 %v1569_v1 }
 0x560   :  { %v1873_v36 = vpop.eup %1872 }
 0x561   :  { %v1343_v55 = vmul.f32 %v1873_v36, %v270_v23  ;;  %v1875_v58 = vpop.eup %1874 }
 0x562   :  { %v1877_v11 = vpop.eup %1876  ;;  %v1344_v17 = vmul.f32 %v1875_v58, %v275_v37 }
 0x563   :  { %v1359_v6 = vmul.f32 %v1351_v61, %v1343_v55  ;;  %v1879_v18 = vpop.eup %1878  ;;  %v1345_v16 = vmul.f32 %v1877_v11, %v280_v26 }
 0x564   :  { %v1881_v19 = vpop.eup %1880  ;;  %v1360_v20 = vmul.f32 %v1352_v12, %v1344_v17  ;;  %v1346_v30 = vmul.f32 %v1879_v18, %v285_v34 }
 0x565   :  { %v1361_v25 = vmul.f32 %v1353_v15, %v1345_v16  ;;  %v1347_v63 = vmul.f32 %v1881_v19, %v290_v41  ;;  %v1571_v15 = vmul.f32 -1.442695, %v2197_v48 }
 0x566   :  { %v1362_v31 = vmul.f32 %v1354_v22, %v1346_v30 }
 0x5dc   :  { %v1285_v24 = vpop.xlane.xlu0 %1284 }
 0x5dd   :  { %v1355_v14 = vmul.f32 %v1285_v24, %v2149_v3  ;;  %v1883_v3 = vpop.eup %1882 }
 0x5de   :  { %v1324_v23 = vadd.f32 1.0, %v1883_v3 }
 0x5e0   :  { %1884 = vrcp.f32 %v1324_v23 }
 0x5e1   :  { %1886 = vpow2.f32 %v1570_v39 }
 0x5ea   :  { %v1885_v9 = vpop.eup %1884 }
 0x5eb   :  { %v1348_v26 = vmul.f32 %v1885_v9, %v2192_v43  ;;  %v1887_v36 = vpop.eup %1886 }
 0x5ec   :  { %v1325_v61 = vadd.f32 1.0, %v1887_v36 }
 0x5ee   :  { %1888 = vrcp.f32 %v1325_v61 }
 0x5ef   :  { %1890 = vpow2.f32 %v1571_v15 }
 0x5f8   :  { %v1889_v53 = vpop.eup %1888 }
 0x5f9   :  { %v1349_v55 = vmul.f32 %v1889_v53, %v2200_v51  ;;  %v1173_v51 = vld [vmem:[#allocation3 + $0x38] sm:$0xff]  ;;  %v1891_v33 = vpop.eup %1890 }
 0x5fa   :  { %v1326_v17 = vadd.f32 1.0, %v1891_v33 }
 0x5fc   :  { %1892 = vrcp.f32 %v1326_v17 }
 0x606   :  { %v1893_v24 = vpop.eup %1892 }
 0x607   :  { %v1350_v16 = vmul.f32 %v1893_v24, %v2197_v48 }
 0x617   :  { %v1091_v57 = vpop.f32.mrb[20].mxu1 }
 0x618   :  { %v1092_v59 = vadd.f32 %v1091_v57, %v1021_v56  ;;  %v1742_v0 = vpop.f32.mrb[21].mxu1 }
 0x61a   :  { %1095 = vst.msk [vmem:[#allocation3 + $0x28] sm:$0xff] %vm64_vm0, %v1092_v59  ;;  %1748 = vmatmul.mubr.msk.f32.vlgmr.msra.gmra.mrb[14].mxu0 %vm64_vm0, %v1092_v59 }
 0x61b   :  { %1820 = vmatpush3.bf16.msra.mxu0 %v1817_v35  ;;  %1765 = vmatprep.mubr.msk.f32.mxu0 %vm308_vm1, %v1359_v6  ;;  %v1363_v35 = vmul.f32 %v1355_v14, %v1347_v63 }
 0x61c   :  { %1822 = vmatprep.subr.bf16.mxu0 %v1821_v2 }
 0x61f   :  { %1824 = vmatpush3.bf16.msra.mxu0 %v1821_v2 }
 0x621   :  { %v1253_v28 = vld [vmem:[#allocation3 + $0x28] sm:$0xff] }
 0x622   :  { %1766 = vmatmul.mubr.msk.f32.vlgmr.msra.gmra.mrb[16].mxu0 %vm308_vm1, %v1360_v20  ;;  %v1268_v60 = vmul.f32 %v2235_v29, %v1253_v28 }
 0x623   :  { %1768 = vmatprep.mubr.msk.f32.mxu0 %vm308_vm1, %v1361_v25 }
 0x624   :  { %v1286_v32 = vsel %vm64_vm0, %v1268_v60, 0.0 }
 0x625   :  { %1287 = vadd.xlane.f32.xlu1 %v1286_v32 }
 0x626   :  { %1769 = vmatmul.mubr.msk.f32.gmra.mrb[18].mxu0 %vm308_vm1, %v1362_v31 }
 0x627   :  { %1771 = vmatprep.mubr.msk.f32.mxu0 %vm308_vm1, %v1363_v35 }
 0x6b2   :  { %v1288_v37 = vpop.xlane.xlu1 %1287 }
 0x6b3   :  { %v1356_v38 = vmul.f32 %v1288_v37, %v2202_v62 }
 0x6b5   :  { %v1364_v34 = vmul.f32 %v1356_v38, %v1348_v26 }
 0x6b7   :  { %1772 = vmatmul.mubr.msk.f32.gmra.mrb[20].mxu0 %vm308_vm1, %v1364_v34 }
 0x6ed   :  { %v1167_v41 = vpop.f32.mrb[14].mxu0 }
 0x6ee   :  { %v1168_v42 = vadd.f32 %v1167_v41, %v1097_v40  ;;  %v1749_v13 = vpop.f32.mrb[15].mxu0 }
 0x6f0   :  { %1171 = vst.msk [vmem:[#allocation3 + $0x30] sm:$0xff] %vm64_vm0, %v1168_v42  ;;  %1755 = vmatmul.mubr.msk.f32.vlgmr.msra.gmra.mrb[22].mxu1 %vm64_vm0, %v1168_v42 }
 0x6f5   :  { %v1767_v10 = vpop.f32.mrb[16].mxu0 }
 0x6f6   :  { %v1474_v45 = vadd.f32 %v1767_v10, %v1572_v44  ;;  %v1468_v43 = vpop.f32.mrb[17].mxu0 }
 0x6f7   :  { %v1469_v50 = vadd.f32 %v1572_v44, %v1468_v43  ;;  %v1254_v62 = vld [vmem:[#allocation3 + $0x30] sm:$0xff] }
 0x6f8   :  { %1508 = vst.msk [vmem:[%s2377_s14 + $0x8] sm:$0xff] %vm64_vm0, %v1474_v45  ;;  %v1269_v27 = vmul.f32 %v2235_v29, %v1254_v62 }
 0x6f9   :  { %1507 = vst.msk [vmem:[%s2377_s14] sm:$0xff] %vm64_vm0, %v1469_v50  ;;  %v1770_v46 = vpop.f32.mrb[18].mxu0 }
 0x6fa   :  { %v1484_v47 = vadd.f32 %v1770_v46, %v1572_v44  ;;  %v1478_v49 = vpop.f32.mrb[19].mxu0  ;;  %v1289_v21 = vsel %vm64_vm0, %v1269_v27, 0.0 }
 0x6fb   :  { %v1479_v52 = vadd.f32 %v1572_v44, %v1478_v49  ;;  %1290 = vadd.xlane.f32.xlu0 %v1289_v21 }
 0x6fc   :  { %1510 = vst.msk [vmem:[%s2377_s14 + $0x18] sm:$0xff] %vm64_vm0, %v1484_v47 }
 0x6fd   :  { %1509 = vst.msk [vmem:[%s2377_s14 + $0x10] sm:$0xff] %vm64_vm0, %v1479_v52 }
 0x788   :  { %v1291_v54 = vpop.xlane.xlu0 %1290 }
 0x789   :  { %v1357_v56 = vmul.f32 %v1291_v54, %v2206_v4 }
 0x78a   :  { %v1773_v57 = vpop.f32.mrb[20].mxu0 }
 0x78b   :  { %v1365_v59 = vmul.f32 %v1357_v56, %v1349_v55  ;;  %v1494_v0 = vadd.f32 %v1773_v57, %v1572_v44  ;;  %v1488_v2 = vpop.f32.mrb[21].mxu0 }
 0x78c   :  { %v1489_v6 = vadd.f32 %v1572_v44, %v1488_v2 }
 0x78d   :  { %1512 = vst.msk [vmem:[%s2377_s14 + $0x28] sm:$0xff] %vm64_vm0, %v1494_v0  ;;  %1774 = vmatprep.mubr.msk.f32.mxu0 %vm308_vm1, %v1365_v59 }
 0x78e   :  { %1511 = vst.msk [vmem:[%s2377_s14 + $0x20] sm:$0xff] %vm64_vm0, %v1489_v6 }
 0x7c3   :  { %v1243_v7 = vpop.f32.mrb[22].mxu1 }
 0x7c4   :  { %v1244_v4 = vadd.f32 %v1243_v7, %v1173_v51  ;;  %v1756_v8 = vpop.f32.mrb[23].mxu1 }
 0x7c6   :  { %1247 = vst.msk [vmem:[#allocation3 + $0x38] sm:$0xff] %vm64_vm0, %v1244_v4 }
 0x7cd   :  { %v1255_v58 = vld [vmem:[#allocation3 + $0x38] sm:$0xff] }
 0x7ce   :  { %v1270_v11 = vmul.f32 %v2235_v29, %v1255_v58 }
 0x7d0   :  { %v1292_v12 = vsel %vm64_vm0, %v1270_v11, 0.0 }
 0x7d1   :  { %1293 = vadd.xlane.f32.xlu1 %v1292_v12 }
 0x85e   :  { %v1294_v18 = vpop.xlane.xlu1 %1293 }
 0x85f   :  { %v1358_v19 = vmul.f32 %v1294_v18, %v2208_v5 }
 0x861   :  { %v1366_v20 = vmul.f32 %v1358_v19, %v1350_v16 }
 0x863   :  { %1775 = vmatmul.mubr.msk.f32.gmra.mrb[22].mxu0 %vm308_vm1, %v1366_v20 }
 0x936   :  { %v1776_v22 = vpop.f32.mrb[22].mxu0 }
 0x937   :  { %v1504_v29 = vadd.f32 %v1776_v22, %v1572_v44  ;;  %v1498_v25 = vpop.f32.mrb[23].mxu0 }
 0x938   :  { %v1499_v14 = vadd.f32 %v1572_v44, %v1498_v25 }
 0x939   :  { %1514 = vst.msk [vmem:[%s2377_s14 + $0x38] sm:$0xff] %vm64_vm0, %v1504_v29 }
 0x93a   :  { %1513 = vst.msk [vmem:[%s2377_s14 + $0x30] sm:$0xff] %vm64_vm0, %v1499_v14 }

</bundles_post_ra>
